<compile_context>
chip_gen: v7x
topology: tpu7x:2x2x1
jax: 0.10.0
libtpu: 0.0.40
codegen_flags: <defaults>
</compile_context>

<pallas_src>
import functools
import math

import jax
import jax.numpy as jnp
from jax.experimental import pallas as pl
from jax.experimental.pallas import tpu as pltpu


# ---------------------------------------------------------------------------
# Hardware-aware sizing helpers
# ---------------------------------------------------------------------------

_MXU_DIM = 256                       # v6e / v7x systolic M dimension
_FALLBACK_VMEM = 64 * 1024 * 1024    # assume smallest generation (v7x) if query fails


def _vmem_capacity_bytes():
    """Physical VMEM of the attached TPU (64 MiB v7x, 128 MiB v5e/v6e)."""
    try:
        info = pltpu.get_tpu_info()
        for attr in ("vmem_capacity_bytes", "vmem_size_bytes", "vmem_bytes"):
            val = getattr(info, attr, None)
            if val:
                return int(val)
    except Exception:
        pass
    return _FALLBACK_VMEM


def _vmem_budgets():
    cap = _vmem_capacity_bytes()
    limit = min(int(cap * 0.75), 112 * 1024 * 1024)   # scoped-VMEM limit
    budget = int(cap * 0.45)                          # working-set budget for tiling
    return budget, limit


def _sublane_multiple(itemsize):
    # f32 -> 8, bf16 -> 16, int8/fp8 -> 32 rows per packed vreg tile.
    return max(8, 32 // int(itemsize))


def _round_up(x, m):
    return ((x + m - 1) // m) * m


# ---------------------------------------------------------------------------
# Probe: does this runtime accept single-buffered (pl.Buffered(1)) BlockSpecs?
# Resident weight/bias blocks don't need a second buffer; this frees VMEM for
# larger N tiles (matters most on v7x's 64 MiB). Falls back gracefully.
# ---------------------------------------------------------------------------

def _probe_single_buffering():
    try:
        def body(x_ref, o_ref):
            o_ref[...] = x_ref[...] + 1.0

        fn = pl.pallas_call(
            body,
            out_shape=jax.ShapeDtypeStruct((16, 128), jnp.float32),
            grid=(2,),
            in_specs=[pl.BlockSpec((8, 128), lambda i: (i, 0),
                                   pipeline_mode=pl.Buffered(1))],
            out_specs=pl.BlockSpec((8, 128), lambda i: (i, 0)),
        )
        x = jnp.arange(16 * 128, dtype=jnp.float32).reshape(16, 128)
        y = jax.block_until_ready(fn(x))
        return bool(jnp.allclose(y, x + 1.0))
    except Exception:
        return False


_SINGLE_BUFFER_RESIDENT = _probe_single_buffering()


def _resident_spec(block_shape, index_map):
    """BlockSpec for a block whose index is constant along the inner grid axes."""
    if _SINGLE_BUFFER_RESIDENT:
        return pl.BlockSpec(block_shape, index_map, pipeline_mode=pl.Buffered(1))
    return pl.BlockSpec(block_shape, index_map)


# ---------------------------------------------------------------------------
# Kernels
# ---------------------------------------------------------------------------

def _gl_kernel(x_ref, w_ref, b_ref, o_ref, *, precision):
    # x: (tile_n, din_g)  w: (din_g, dout_g)  b: (1, dout_g)  o: (tile_n, dout_g)
    acc = jnp.dot(x_ref[...], w_ref[...], precision=precision,
                  preferred_element_type=jnp.float32)
    o_ref[...] = (acc + b_ref[...]).astype(o_ref.dtype)


def _gl_kernel_nobias(x_ref, w_ref, o_ref, *, precision):
    acc = jnp.dot(x_ref[...], w_ref[...], precision=precision,
                  preferred_element_type=jnp.float32)
    o_ref[...] = acc.astype(o_ref.dtype)


def _gl_kernel_ktiled(x_ref, w_ref, b_ref, o_ref, acc_ref, *, precision):
    k = pl.program_id(2)

    @pl.when(k == 0)
    def _():
        acc_ref[...] = jnp.zeros_like(acc_ref)

    acc_ref[...] += jnp.dot(x_ref[...], w_ref[...], precision=precision,
                            preferred_element_type=jnp.float32)

    @pl.when(k == pl.num_programs(2) - 1)
    def _():
        o_ref[...] = (acc_ref[...] + b_ref[...]).astype(o_ref.dtype)


def _gl_kernel_ktiled_nobias(x_ref, w_ref, o_ref, acc_ref, *, precision):
    k = pl.program_id(2)

    @pl.when(k == 0)
    def _():
        acc_ref[...] = jnp.zeros_like(acc_ref)

    acc_ref[...] += jnp.dot(x_ref[...], w_ref[...], precision=precision,
                            preferred_element_type=jnp.float32)

    @pl.when(k == pl.num_programs(2) - 1)
    def _():
        o_ref[...] = acc_ref[...].astype(o_ref.dtype)


# ---------------------------------------------------------------------------
# Tile selection
# ---------------------------------------------------------------------------

def _pick_tile_k(din_g, dout_g, w_itemsize, budget, tile_k):
    if tile_k is not None:
        assert din_g % tile_k == 0 and tile_k % 128 == 0, (din_g, tile_k)
        return int(tile_k)
    tk = din_g
    # Keep the (double-buffered along k) weight chunk under ~1/3 of the budget so
    # large per-group weights don't force tiny N tiles (matters on v7x 64 MiB).
    while (tk > 128 and (tk // 2) % 128 == 0
           and 2 * w_itemsize * tk * dout_g > budget // 3):
        tk //= 2
    return tk


def _pick_tile_n(n, per_row_bytes, fixed_bytes, budget, max_tile_n, sublane):
    tile_n = min(int(max_tile_n), n)
    while tile_n > _MXU_DIM and fixed_bytes + tile_n * per_row_bytes > budget:
        tile_n //= 2
    if tile_n < n:
        if tile_n >= _MXU_DIM:
            tile_n = (tile_n // _MXU_DIM) * _MXU_DIM   # keep the MXU M dim full
        else:
            tile_n = max(sublane, (tile_n // sublane) * sublane)
    return tile_n


# ---------------------------------------------------------------------------
# Public wrapper
# ---------------------------------------------------------------------------

def group_linear(x, weight, bias=None, *, max_tile_n=2048, tile_k=None,
                 compute_dtype=None, precision=None):
    """Pallas TPU implementation of GroupLinear.forward.

    x:      (bs, ts, din)
    weight: (nb, din // nb, dout // nb)
    bias:   (nb, dout // nb) or None
    returns (bs, ts, dout)
    """
    bs, ts, din = x.shape
    nb, din_g, dout_g = weight.shape
    assert din == nb * din_g, (din, nb, din_g)
    dout = nb * dout_g
    n = bs * ts
    out_dtype = x.dtype

    # ---- lane-unaligned groups: zero-pad each group slab up to the next
    # 128-lane multiple and reuse the lane-dense fast path (unmasked vst stores,
    # pipelined N, no wrapper transposes).
    if (din_g % 128 != 0) or (dout_g % 128 != 0):
        din_gp = _round_up(din_g, 128)
        dout_gp = _round_up(dout_g, 128)
        xg = x.reshape(n, nb, din_g)
        xg = jnp.pad(xg, ((0, 0), (0, 0), (0, din_gp - din_g)))
        xp = xg.reshape(bs, ts, nb * din_gp)
        wp = jnp.pad(weight, ((0, 0), (0, din_gp - din_g), (0, dout_gp - dout_g)))
        bp = None if bias is None else jnp.pad(bias, ((0, 0), (0, dout_gp - dout_g)))
        yp = group_linear(xp, wp, bp, max_tile_n=max_tile_n, tile_k=tile_k,
                          compute_dtype=compute_dtype, precision=precision)
        yp = yp.reshape(n, nb, dout_gp)[:, :, :dout_g]
        return yp.reshape(bs, ts, dout)

    # ---- fast path: group slabs indexed directly in (N, din)/(N, dout) layout.
    if compute_dtype is None:
        compute_dtype = x.dtype
    x2 = x.reshape(n, din).astype(compute_dtype)      # free reshape, no transpose
    w = weight.astype(compute_dtype)
    has_bias = bias is not None
    bias3 = bias.reshape(nb, 1, dout_g).astype(jnp.float32) if has_bias else None

    c_item = jnp.dtype(compute_dtype).itemsize
    o_item = jnp.dtype(out_dtype).itemsize
    budget, vmem_limit = _vmem_budgets()
    sublane = _sublane_multiple(min(c_item, o_item))
    w_bufs = 1 if _SINGLE_BUFFER_RESIDENT else 2

    tk = _pick_tile_k(din_g, dout_g, c_item, budget, tile_k)
    k_tiled = tk < din_g
    kpg = din_g // tk                                  # K chunks per group

    if k_tiled:
        # double-buffered x / out tiles + f32 accumulator + double-buffered W chunk
        per_row = 2 * c_item * tk + 2 * o_item * dout_g + 4 * dout_g
        fixed = 2 * c_item * tk * dout_g + 8 * dout_g
    else:
        per_row = 2 * c_item * din_g + 2 * o_item * dout_g
        fixed = w_bufs * c_item * din_g * dout_g + 8 * dout_g

    tile_n = _pick_tile_n(n, per_row, fixed, budget, max_tile_n, sublane)
    n_tiles = pl.cdiv(n, tile_n)

    cost = pl.CostEstimate(
        flops=2 * n * nb * din_g * dout_g,
        bytes_accessed=(n * din * c_item + nb * din_g * dout_g * c_item
                        + n * dout * o_item
                        + (nb * dout_g * 4 if has_bias else 0)),
        transcendentals=0,
    )
    out_shape = jax.ShapeDtypeStruct((n, dout), out_dtype)

    if k_tiled:
        x_spec = pl.BlockSpec((tile_n, tk), lambda g, i, k: (i, g * kpg + k))
        w_spec = pl.BlockSpec((None, tk, dout_g), lambda g, i, k: (g, k, 0))
        b_spec = _resident_spec((None, 1, dout_g), lambda g, i, k: (g, 0, 0))
        out_spec = pl.BlockSpec((tile_n, dout_g), lambda g, i, k: (i, g))
        kern = _gl_kernel_ktiled if has_bias else _gl_kernel_ktiled_nobias
        in_specs = [x_spec, w_spec] + ([b_spec] if has_bias else [])
        operands = (x2, w, bias3) if has_bias else (x2, w)
        out = pl.pallas_call(
            functools.partial(kern, precision=precision),
            out_shape=out_shape,
            grid=(nb, n_tiles, kpg),                  # reduction axis innermost
            in_specs=in_specs,
            out_specs=out_spec,
            scratch_shapes=[pltpu.VMEM((tile_n, dout_g), jnp.float32)],
            compiler_params=pltpu.CompilerParams(
                dimension_semantics=("parallel", "parallel", "arbitrary"),
                vmem_limit_bytes=vmem_limit),
            cost_estimate=cost,
        )(*operands)
    else:
        x_spec = pl.BlockSpec((tile_n, din_g), lambda g, i: (i, g))
        # Weight / bias block index is constant along the inner N-tile axis ->
        # stays resident in VMEM (single-buffered when supported).
        w_spec = _resident_spec((None, din_g, dout_g), lambda g, i: (g, 0, 0))
        b_spec = _resident_spec((None, 1, dout_g), lambda g, i: (g, 0, 0))
        out_spec = pl.BlockSpec((tile_n, dout_g), lambda g, i: (i, g))
        kern = _gl_kernel if has_bias else _gl_kernel_nobias
        in_specs = [x_spec, w_spec] + ([b_spec] if has_bias else [])
        operands = (x2, w, bias3) if has_bias else (x2, w)
        out = pl.pallas_call(
            functools.partial(kern, precision=precision),
            out_shape=out_shape,
            grid=(nb, n_tiles),                       # group outer, N tiles inner
            in_specs=in_specs,
            out_specs=out_spec,
            compiler_params=pltpu.CompilerParams(
                dimension_semantics=("parallel", "parallel"),
                vmem_limit_bytes=vmem_limit),
            cost_estimate=cost,
        )(*operands)

    return out.reshape(bs, ts, dout)


# ---------------------------------------------------------------------------
# Parameter init + pure-JAX reference (mirrors the PyTorch forward)
# ---------------------------------------------------------------------------

def init_group_linear_params(key, din, dout, nb, a=None):
    din_g = din // nb
    dout_g = dout // nb
    if a is None:
        a = 1.0 / math.sqrt(dout_g)
    kw, kb = jax.random.split(key)
    weight = jax.random.uniform(
        kw, (nb, din_g, dout_g), minval=-a, maxval=a, dtype=jnp.float32)
    bias = jax.random.uniform(
        kb, (nb, dout_g), minval=-a, maxval=a, dtype=jnp.float32)
    return weight, bias


def _reference_group_linear(x, weight, bias):
    bs, ts, m = x.shape
    nb, din_g, dout_g = weight.shape
    xr = x.reshape(bs * ts, nb, m // nb).transpose(1, 0, 2)   # (nb, N, din_g)
    y = jnp.einsum("gnk,gkd->gnd", xr, weight,
                   precision=jax.lax.Precision.HIGHEST)       # bmm
    y = y.transpose(1, 0, 2)                                  # (N, nb, dout_g)
    if bias is not None:
        y = y + bias[None, :, :]
    return y.reshape(bs, ts, dout_g * nb)


if __name__ == "__main__":
    key = jax.random.PRNGKey(0)
    gl = jax.jit(group_linear,
                 static_argnames=("max_tile_n", "tile_k", "compute_dtype",
                                  "precision"))

    configs = [
        # (bs, ts, din, dout, nb), kwargs, use_bias, tolerance
        ((2, 8, 512, 512, 4), dict(), True, 1e-3),                      # single N tile
        ((4, 512, 512, 512, 4), dict(max_tile_n=512), True, 1e-3),      # multi N tile, resident W
        ((3, 100, 256, 256, 2), dict(max_tile_n=256), True, 1e-3),      # ragged N tail (masked)
        ((2, 64, 1024, 512, 2), dict(tile_k=256), True, 1e-3),          # K-tiled accumulator path
        ((2, 8, 512, 512, 4), dict(), False, 1e-3),                     # no-bias kernel variant
        ((2, 8, 32, 32, 4), dict(), True, 1e-3),                        # lane-unaligned -> padded path
        ((2, 128, 512, 512, 4), dict(compute_dtype=jnp.bfloat16), True, 3e-2),  # bf16 compute, f32 acc
    ]
    for idx, ((bs, ts, din, dout, nb), kwargs, use_bias, tol) in enumerate(configs):
        key, kx, kp = jax.random.split(key, 3)
        x = jax.random.normal(kx, (bs, ts, din), dtype=jnp.float32)
        weight, bias = init_group_linear_params(kp, din, dout, nb)
        if not use_bias:
            bias = None

        y = jax.block_until_ready(gl(x, weight, bias, **kwargs))
        y_ref = _reference_group_linear(x, weight, bias)

        assert y.shape == (bs, ts, dout), (idx, y.shape)
        assert jnp.allclose(y, y_ref, atol=tol, rtol=tol), \
            f"mismatch vs reference in config {idx}"

    print("KERNEL_OK")
</pallas_src>

<mosaic_0001>
module attributes {stable_mosaic.version = 11 : i64} {
  func.func @body(%arg0: i32, %arg1: memref<8x128xf32, #tpu.memory_space<vmem>>, %arg2: memref<8x128xf32, #tpu.memory_space<vmem>>) attributes {dimension_semantics = [#tpu.dimension_semantics<arbitrary>], iteration_bounds = array<i64: 2>, scalar_prefetch = 0 : i64, scratch_operands = 0 : i64, tpu.core_type = #tpu.core_type<tc>, window_params = [{pipeline_mode = #tpu.pipeline_mode<synchronous>, transform_indices = @transform_0, window_bounds = array<i64: 8, 128>}, {transform_indices = @transform_1, window_bounds = array<i64: 8, 128>}]} {
    %c0 = arith.constant 0 : index
    %c0_0 = arith.constant 0 : index
    %0 = vector.load %arg1[%c0, %c0_0] : memref<8x128xf32, #tpu.memory_space<vmem>>, vector<8x128xf32>
    %cst = arith.constant 1.000000e+00 : f32
    %1 = vector.broadcast %cst : f32 to vector<8x128xf32>
    %2 = arith.addf %0, %1 : vector<8x128xf32>
    %c0_1 = arith.constant 0 : index
    %c0_2 = arith.constant 0 : index
    %3 = vector.load %arg2[%c0_1, %c0_2] : memref<8x128xf32, #tpu.memory_space<vmem>>, vector<8x128xf32>
    tpu.vector_store %arg2[%c0_1, %c0_2], %2 {strides = array<i32>} : memref<8x128xf32, #tpu.memory_space<vmem>>, vector<8x128xf32>,
    return
  }
  func.func @transform_0(%arg0: i32) -> (i32, i32) {
    %c0_i32 = arith.constant 0 : i32
    %c0_i32_0 = arith.constant 0 : i32
    return %arg0, %c0_i32 : i32, i32
  }
  func.func @transform_1(%arg0: i32) -> (i32, i32) {
    %c0_i32 = arith.constant 0 : i32
    %c0_i32_0 = arith.constant 0 : i32
    return %arg0, %c0_i32 : i32, i32
  }
}

module attributes {stable_mosaic.version = 11 : i64} {
  func.func @_gl_kernel(%arg0: i32, %arg1: i32, %arg2: memref<16x128xf32, #tpu.memory_space<vmem>>, %arg3: memref<1x128x128xf32, #tpu.memory_space<vmem>>, %arg4: memref<1x1x128xf32, #tpu.memory_space<vmem>>, %arg5: memref<16x128xf32, #tpu.memory_space<vmem>>) attributes {dimension_semantics = [#tpu.dimension_semantics<parallel>, #tpu.dimension_semantics<parallel>], iteration_bounds = array<i64: 4, 1>, scalar_prefetch = 0 : i64, scratch_operands = 0 : i64, tpu.core_type = #tpu.core_type<tc>, window_params = [{transform_indices = @transform_0, window_bounds = array<i64: 16, 128>}, {transform_indices = @transform_1, window_bounds = array<i64: 1, 128, 128>}, {transform_indices = @transform_2, window_bounds = array<i64: 1, 1, 128>}, {transform_indices = @transform_3, window_bounds = array<i64: 16, 128>}]} {
    %c0 = arith.constant 0 : index
    %c0_0 = arith.constant 0 : index
    %0 = vector.load %arg2[%c0, %c0_0] : memref<16x128xf32, #tpu.memory_space<vmem>>, vector<16x128xf32>
    %c0_1 = arith.constant 0 : index
    %c0_2 = arith.constant 0 : index
    %c0_3 = arith.constant 0 : index
    %1 = vector.load %arg3[%c0_1, %c0_2, %c0_3] : memref<1x128x128xf32, #tpu.memory_space<vmem>>, vector<1x128x128xf32>
    %2 = vector.shape_cast %1 : vector<1x128x128xf32> to vector<128x128xf32>
    %cst = arith.constant dense<0.000000e+00> : vector<16x128xf32>
    %3 = tpu.matmul %0, %2, %cst {dimension_numbers = #tpu.dot_dimension_numbers<[1], [0], [0], [1], [0, 0, 1, 1], [], []>} : vector<16x128xf32>, vector<128x128xf32>, vector<16x128xf32> -> vector<16x128xf32>
    %c0_4 = arith.constant 0 : index
    %c0_5 = arith.constant 0 : index
    %c0_6 = arith.constant 0 : index
    %4 = vector.load %arg4[%c0_4, %c0_5, %c0_6] : memref<1x1x128xf32, #tpu.memory_space<vmem>>, vector<1x1x128xf32>
    %5 = vector.shape_cast %4 : vector<1x1x128xf32> to vector<1x128xf32>
    %6 = vector.broadcast %5 : vector<1x128xf32> to vector<16x128xf32>
    %7 = arith.addf %3, %6 : vector<16x128xf32>
    %c0_7 = arith.constant 0 : index
    %c0_8 = arith.constant 0 : index
    %8 = vector.load %arg5[%c0_7, %c0_8] : memref<16x128xf32, #tpu.memory_space<vmem>>, vector<16x128xf32>
    tpu.vector_store %arg5[%c0_7, %c0_8], %7 {strides = array<i32>} : memref<16x128xf32, #tpu.memory_space<vmem>>, vector<16x128xf32>,
    return
  }
  func.func @transform_0(%arg0: i32, %arg1: i32) -> (i32, i32) {
    %c0_i32 = arith.constant 0 : i32
    return %arg1, %arg0 : i32, i32
  }
  func.func @transform_1(%arg0: i32, %arg1: i32) -> (i32, i32, i32) {
    %c0_i32 = arith.constant 0 : i32
    %c0_i32_0 = arith.constant 0 : i32
    %c0_i32_1 = arith.constant 0 : i32
    return %arg0, %c0_i32, %c0_i32_0 : i32, i32, i32
  }
  func.func @transform_2(%arg0: i32, %arg1: i32) -> (i32, i32, i32) {
    %c0_i32 = arith.constant 0 : i32
    %c0_i32_0 = arith.constant 0 : i32
    %c0_i32_1 = arith.constant 0 : i32
    return %arg0, %c0_i32, %c0_i32_0 : i32, i32, i32
  }
  func.func @transform_3(%arg0: i32, %arg1: i32) -> (i32, i32) {
    %c0_i32 = arith.constant 0 : i32
    return %arg1, %arg0 : i32, i32
  }
}

</mosaic_0001>

<bundles_post_ra>
// kernel: tpu_custom_call.1
= control target key start
LH: loop header
LB: loop body
LE: loop exit
PB: predicated region body
PF: predicated region fallthrough
CT: control target
= control target key end

     0   :  { %6 = vsyncpa [#allocation3], 0  ;;  %s499_s0 = inlined_call_operand.hbm [shape: f32[16,128], index: 0, kind: input, shape index: {}]   ;;  %s500_s1 = inlined_call_operand.hbm [shape: f32[16,128], index: 1, kind: output, shape index: {}]  }
   0x1   :  { %7 = vsyncpa [#allocation4], 0 }
   0x2   :  { %9 = vsyncpa [#allocation4 + $0x1], 0  ;;  %s358_s6 = smov 0   ;;  %s360_s7 = smov 0  }
   0x3   :  { %s362_s8 = smov 0   ;;  %s364_s9 = smov 0  }
   0x4 LB: > { %s379_s10 = sadd.s32 4294967295, %s344_s9   ;;  %s193_s11 = sadd.s32 4294967294, %s344_s9   ;;  %s344_s9 = sphi %s364_s9, %s517_s9   ;;  %s340_s8 = sphi %s362_s8, %s516_s8   ;;  %s336_s7 = sphi %s360_s7, %s515_s7   ;;  %s332_s6 = sphi %s358_s6, %s514_s6  }
   0x5   : > { %s383_s12 = sadd.s32 1, %s344_s9   ;;  %s22_s13 = sadd.s32 1, %s340_s8 }
   0x6   : > { %s19_s14 = ssub.s32 %s344_s9, %s383_s12  ;;  %p35_p0 = scmp.ne.s32.totalorder %s336_s7, %s332_s6 }
   0x7   : > { %p20_p1 = scmp.eq.s32.totalorder %s19_s14, 0  ;;  %p36_p2 = scmp.eq.s32.totalorder %s379_s10, 0 }
   0x8   : > { %p58_p3 = scmp.ne.s32.totalorder %s340_s8, %s336_s7  ;;  %p59_p4 = scmp.eq.s32.totalorder %s379_s10, 1 }
   0x9   : > { %s395_s15 = scalar_select %p20_p1, %s340_s8, %s22_s13  }
   0xa   : > { %p397_p5 = por %p59_p4, %p58_p3  ;;  %p65_p6 = scmp.eq.s32.totalorder %s193_s11, 1 }
   0xb   : > { %p194_p7 = scmp.ge.s32.totalorder %s344_s9, 1  ;;  %p402_p8 = por %p36_p2, %p35_p0 }
   0xc   : > { %s505_s16 = scalar_select %p397_p5, 1, 0 }
   0xd   : > { %s506_s17 = scalar_select %p402_p8, 1, 0 }
   0xe   : > { %p72_p9 = scmp.lt.s32.totalorder %s344_s9, 3  ;;  %p407_p10 = por %p65_p6, %p35_p0 }
   0xf   : > { %s195_s19 = sshll.u32 %s379_s10, 7  ;;  %s346_s21 = smov [#allocation2]  }
  0x10   : > { %s507_s18 = scalar_select %p407_p10, 1, 0 }
  0x11   : > { %p412_p11 = pnand %p194_p7, %p72_p9  ;;  %s87_s22 = sshll.u32 %s346_s21, 4  ;;  %s88_s22 = int_to_ptr.vmem [resolvable:$true] %s87_s22 }
  0x12   : > { %s85_s25 = scalar_lea.hbm %s499_s0, %s195_s19  ;;  %s253_s30 = scalar_lea.hbm %s499_s0, 256 }
  0x13   : > { %s508_s20 = scalar_select %p412_p11, 1, 0 }
  0x14   : > { %p206_p12 = pneg %p412_p11  ;;  %s248_s27 = scalar_lea.hbm %s85_s25, 128 }
  0x15   : > { %p249_p0 = scmp.ne.s32.totalorder %s85_s25, %s248_s27  ;;  %p254_p4 = scmp.lt.u32.totalorder %s85_s25, %s499_s0 }
  0x16   : > { %p425_p13 = pnand %p206_p12, %p402_p8  ;;  %p255_p6 = scmp.lt.u32.totalorder %s253_s30, %s248_s27 }
  0x17   : > { %p257_p9 = scmp.lt.u32.totalorder %s248_s27, %s85_s25 }
  0x18   : > { %p250_p1 = pneg %p425_p13  ;;  %p256_p7 = por %p255_p6, %p254_p4 }
  0x1a   : > { %p251_p2 = pnand %p250_p1, %p249_p0  ;;  %p258_p12 = por %p257_p9, %p256_p7 }
  0x1c   : > { %p252_p3 = pneg %p251_p2 }
  0x1e   : > { %p259_p10 = pnand %p258_p12, %p252_p3 }
  0x20   : > { %262 = shalt.err (!%p259_p10)
}
  0x21   : > { %s263_s4 = scalar_lea.vmem %s88_s22, 128  ;;  %p271_p8 = scmp.lt.s32.totalorder %s88_s22, %s88_s22 }
  0x22   : > { %p264_p5 = scmp.ne.s32.totalorder %s88_s22, %s263_s4  ;;  %p272_p11 = scmp.lt.s32.totalorder %s263_s4, %s263_s4 }
  0x24   : > { %p266_p0 = pnand %p264_p5, %p250_p1  ;;  %p273_p4 = por %p272_p11, %p271_p8 }
  0x26   : > { %p267_p2 = pneg %p266_p0 }
  0x28   : > { %p274_p6 = pnand %p273_p4, %p267_p2 }
  0x2a   : > { %277 = shalt.err (!%p274_p6)
}
  0x2b   : > { %209 = dma.hbm_to_vmem [thread:$0]  (!%p425_p13), %s85_s25, 128, %s88_s22, [#allocation3]  }
  0x2c   : > { %p510_p7 = scmp.ne.s32.totalorder %s508_s20, 0 }
  0x2d   : > { %p511_p10 = scmp.ne.s32.totalorder (!%p510_p7), %s506_s17, 0 }
  0x2e   : > { %100 = sbr.rel (%p510_p7) target bundleno = 80 (0x50), region = 24 }
  0x35   : > { %323 = dma.done.wait (%p511_p10), [#allocation3], 128  }
  0x36   : > { %325 = vsyncadd (%p511_p10), [#allocation3], 4294967168  ;;  %s112_s5 = sand.u32 1, %s336_s7   ;;  %v115_v0 = vld [vmem:[#allocation2] sm:$0xff]  ;;  %s457_s20 = scalar_lea.hbm %s500_s1, %s195_s19 }
  0x37   : > { %s197_s11 = sshll.u32 %s112_s5, 3  ;;  %v116_v1 = vadd.f32 1.0, %v115_v0  ;;  %s119_s17 = scalar_lea.sflag [#allocation4], %s112_s5 }
  0x38   : > { %s114_s13 = scalar_lea.vmem [#allocation5], %s197_s11  ;;  %p512_p8 = scmp.ne.s32.totalorder %s505_s16, 0 }
  0x39   : > { %s132_s14 = sshll.u32 %s114_s13, 4  ;;  %117 = vst [vmem:[%s114_s13] sm:$0xff] %v116_v1  ;;  %s347_s24 = smov [#allocation5]   ;;  %s459_s14 = int_to_ptr.vmem [resolvable:$true] %s132_s14 }
  0x3a   : > { %s278_s23 = scalar_lea.vmem %s459_s14, 128  ;;  %s282_s10 = sshll.u32 %s347_s24, 4  ;;  %s283_s10 = int_to_ptr.vmem [resolvable:$false] %s282_s10 }
  0x3b   : > { %p279_p5 = scmp.ne.s32.totalorder %s459_s14, %s278_s23  ;;  %s284_s25 = scalar_lea.vmem %s283_s10, 256 }
  0x3c   : > { %p285_p1 = scmp.lt.s32.totalorder %s459_s14, %s283_s10  ;;  %p286_p3 = scmp.lt.s32.totalorder %s284_s25, %s278_s23 }
  0x3d   : > { %p280_p11 = pnand %p279_p5, %p512_p8 }
  0x3e   : > { %p287_p9 = por %p286_p3, %p285_p1 }
  0x3f   : > { %p281_p13 = pneg %p280_p11 }
  0x41   : > { %p288_p12 = pnand %p287_p9, %p281_p13 }
  0x43   : > { %291 = shalt.err (!%p288_p12)
}
  0x44   : > { %s292_s19 = scalar_lea.hbm %s457_s20, 128  ;;  %s296_s28 = scalar_lea.hbm %s500_s1, 256 }
  0x45   : > { %p293_p0 = scmp.ne.s32.totalorder %s457_s20, %s292_s19  ;;  %p297_p6 = scmp.lt.u32.totalorder %s457_s20, %s500_s1 }
  0x46   : > { %p298_p7 = scmp.lt.u32.totalorder %s296_s28, %s292_s19  ;;  %p300_p5 = scmp.lt.u32.totalorder %s292_s19, %s457_s20 }
  0x47   : > { %p294_p2 = pnand %p293_p0, %p512_p8 }
  0x48   : > { %p299_p10 = por %p298_p7, %p297_p6 }
  0x49   : > { %p295_p4 = pneg %p294_p2 }
  0x4a   : > { %p301_p11 = por %p300_p5, %p299_p10 }
  0x4c   : > { %p302_p13 = pnand %p301_p11, %p295_p4 }
  0x4e   : > { %305 = shalt.err (!%p302_p13)
}
  0x4f   : > { %204 = dma.vmem_to_hbm [thread:$0]  (%p512_p8), %s459_s14, 128, %s457_s20, %s119_s17  }
  0x50 PF: > { %p214_p1 = scmp.ge.s32.totalorder %s344_s9, 2  ;;  %s144_s2 = sand.u32 1, %s332_s6  }
  0x51   : > { %p513_p3 = scmp.ne.s32.totalorder %s507_s18, 0  ;;  %s145_s3 = scalar_lea.sflag [#allocation4], %s144_s2 }
  0x53   : > { %p211_p9 = pnand %p214_p1, %p513_p3 }
  0x55   : > { %327 = dma.done.wait (!%p211_p9), %s145_s3, 128  }
  0x56   : > { %329 = vsyncadd (!%p211_p9), %s145_s3, 4294967168  ;;  %p12_p12 = scmp.ge.s32.totalorder %s383_s12, 4   ;;  %s514_s6 = smov %s336_s7 }
  0x57   : > { %s515_s7 = smov %s340_s8  ;;  %s516_s8 = smov %s395_s15 }
  0x58   : > { %s517_s9 = smov %s383_s12  ;;  %14 = sbr.rel (!%p12_p12) target bundleno = 4 (0x4), region = 62 }
  0x5f   :  { %150 = vsyncpa [#allocation3], 1 }
  0x60   :  { %152 = vsyncpa [#allocation3 + $0x1], 1 }
  0x61   :  { %153 = vsyncpa [#allocation4], 1 }
  0x62   :  { %155 = vsyncpa [#allocation4 + $0x1], 1 }

// kernel: group_linear.1
= control target key start
LH: loop header
LB: loop body
LE: loop exit
PB: predicated region body
PF: predicated region fallthrough
CT: control target
= control target key end

     0   :  { %8 = vsyncpa [#allocation3], 0  ;;  %s1109_s0 = inlined_call_operand.hbm [shape: f32[16,512], index: 0, kind: input, shape index: {}]   ;;  %s1110_s1 = inlined_call_operand.hbm [shape: f32[4,128,128], index: 1, kind: input, shape index: {}]   ;;  %s1111_s2 = inlined_call_operand.vmem [shape: f32[4,1,128], index: 2, kind: input, shape index: {}]   ;;  %s1112_s3 = inlined_call_operand.hbm [shape: f32[16,512], index: 3, kind: output, shape index: {}]  }
   0x1   :  { %10 = vsyncpa [#allocation3 + $0x1], 0 }
   0x2   :  { %11 = vsyncpa [#allocation6], 0 }
   0x3   :  { %13 = vsyncpa [#allocation6 + $0x1], 0 }
   0x4   :  { %14 = vsyncpa [#allocation4], 0 }
   0x5   :  { %16 = vsyncpa [#allocation4 + $0x1], 0  ;;  %s852_s12 = smov 0   ;;  %s854_s13 = smov 0  }
   0x6   :  { %s856_s14 = smov 0   ;;  %s858_s15 = smov 0  }
   0x7   :  { %s860_s16 = smov 0   ;;  %s862_s17 = smov 0  }
   0x8 LB: > { %s498_s18 = sadd.s32 4294967295, %s821_s17   ;;  %s499_s19 = sadd.s32 4294967294, %s821_s17   ;;  %s821_s17 = sphi %s862_s17, %s22_s17   ;;  %s817_s16 = sphi %s860_s16, %s1128_s16   ;;  %s813_s15 = sphi %s858_s15, %s1127_s15   ;;  %s809_s14 = sphi %s856_s14, %s1126_s14   ;;  %s805_s13 = sphi %s854_s13, %s1125_s13   ;;  %s801_s12 = sphi %s852_s12, %s1124_s12  }
   0x9   : > { %s34_s20 = sadd.s32 1, %s817_s16  ;;  %s43_s21 = sadd.s32 1, %s809_s14 }
   0xa   : > { %p36_p0 = scmp.ge.s32.totalorder %s34_s20, 4  ;;  %p50_p1 = scmp.ne.s32.totalorder %s809_s14, %s805_s13 }
   0xb   : > { %p51_p2 = scmp.eq.s32.totalorder %s821_s17, 0  ;;  %p56_p3 = scmp.ne.s32.totalorder %s805_s13, %s801_s12 }
   0xc   : > { %s1130_s20 = smov (%p36_p0, %s34_s20), 0  ;;  %p57_p5 = scmp.eq.s32.totalorder %s498_s18, 0 }
   0xd   : > { %p893_p4 = por %p51_p2, %p50_p1  ;;  %s39_s23 = ssub.s32 %s817_s16, %s1130_s20 }
   0xe   : > { %p134_p6 = scmp.eq.s32.totalorder %s498_s18, 3  ;;  %p41_p7 = scmp.eq.s32.totalorder %s39_s23, 0 }
   0xf   : > { %p899_p8 = por %p57_p5, %p56_p3  ;;  %p140_p10 = scmp.eq.s32.totalorder %s499_s19, 3 }
  0x10   : > { %p903_p9 = por %p134_p6, %p50_p1  ;;  %p619_p12 = scmp.lt.s32.totalorder %s821_s17, 4 }
  0x11   : > { %s1116_s24 = scalar_select %p899_p8, 1, 0 }
  0x12   : > { %s1117_s25 = scalar_select %p903_p9, 1, 0 }
  0x13   : > { %s908_s26 = scalar_select %p41_p7, %s809_s14, %s43_s21  }
  0x14   : > { %p910_p11 = por %p140_p10, %p56_p3  ;;  %s916_s28 = sand.u32 1, %s809_s14  }
  0x15   : > { %s502_s29 = sshll.u32 %s916_s28, 4  ;;  %s503_s30 = sshll.u32 %s817_s16, 7 }
  0x16   : > { %s1118_s27 = scalar_select %p910_p11, 1, 0 }
  0x17   : > { %s923_s6 = scalar_lea.hbm %s1109_s0, %s503_s30  ;;  %s164_s7 = scalar_lea.vmem [#allocation2], %s502_s29 }
  0x18   : > { %s173_s8 = sshll.u32 %s164_s7, 4  ;;  %p929_p13 = pnand %p619_p12, %p893_p4  ;;  %s925_s8 = int_to_ptr.vmem [resolvable:$true] %s173_s8 }
  0x19   : > { %s161_s10 = scalar_lea.sflag [#allocation3], %s916_s28  ;;  %s675_s11 = scalar_lea.hbm %s923_s6, 256 }
  0x1a   : > { %p676_p0 = scmp.ne.s32.totalorder %s923_s6, %s675_s11  ;;  %p677_p1 = pneg %p929_p13 }
  0x1b   : > { %s680_s21 = scalar_lea.hbm %s1109_s0, 1024  ;;  %p681_p4 = scmp.lt.u32.totalorder %s923_s6, %s1109_s0 }
  0x1c   : > { %p678_p2 = pnand %p677_p1, %p676_p0  ;;  %p682_p5 = scmp.lt.u32.totalorder %s680_s21, %s675_s11 }
  0x1d   : > { %p684_p7 = scmp.lt.u32.totalorder %s675_s11, %s923_s6 }
  0x1e   : > { %p679_p3 = pneg %p678_p2  ;;  %p683_p6 = por %p682_p5, %p681_p4 }
  0x20   : > { %p685_p10 = por %p684_p7, %p683_p6 }
  0x22   : > { %p686_p12 = pnand %p685_p10, %p679_p3 }
  0x24   : > { %689 = shalt.err (!%p686_p12)
}
  0x25   : > { %s690_s29 = scalar_lea.vmem %s925_s8, 256  ;;  %s823_s30 = smov [#allocation2]  }
  0x26   : > { %p691_p0 = scmp.ne.s32.totalorder %s925_s8, %s690_s29  ;;  %s695_s4 = sshll.u32 %s823_s30, 4  ;;  %s696_s4 = int_to_ptr.vmem [resolvable:$false] %s695_s4 }
  0x27   : > { %s697_s5 = scalar_lea.vmem %s696_s4, 512  ;;  %p698_p9 = scmp.lt.s32.totalorder %s925_s8, %s696_s4 }
  0x28   : > { %p693_p2 = pnand %p691_p0, %p677_p1  ;;  %p699_p4 = scmp.lt.s32.totalorder %s697_s5, %s690_s29 }
  0x2a   : > { %p694_p11 = pneg %p693_p2  ;;  %p700_p5 = por %p699_p4, %p698_p9 }
  0x2c   : > { %p701_p6 = pnand %p700_p5, %p694_p11 }
  0x2e   : > { %704 = shalt.err (!%p701_p6)
}
  0x2f   : > { %s824_s7 = smov 512   ;;  %s825_s11 = smov 128  }
  0x30   : > { %s826_s18 = smov 8   ;;  %p507_p9 = scmp.ge.s32.totalorder %s821_s17, 1 }
  0x31   : > { %611 = dma.hbm_to_vmem [thread:$0]  (!%p929_p13), %s923_s6, 256, %s925_s8, %s161_s10, %s824_s7, %s825_s11, %s826_s18  }
  0x32   : > { %p208_p11 = scmp.lt.s32.totalorder %s821_s17, 5  ;;  %s504_s19 = sshll.u32 %s916_s28, 7 }
  0x33   : > { %s516_s22 = sshll.u32 %s817_s16, 11  ;;  %s187_s23 = scalar_lea.vmem [#allocation5], %s504_s19 }
  0x34   : > { %p966_p3 = pnand %p507_p9, %p208_p11  ;;  %s194_s29 = sshll.u32 %s187_s23, 4  ;;  %s976_s29 = int_to_ptr.vmem [resolvable:$true] %s194_s29 }
  0x35   : > { %s974_s5 = scalar_lea.hbm %s1110_s1, %s516_s22  ;;  %s184_s6 = scalar_lea.sflag [#allocation6], %s916_s28 }
  0x36   : > { %s705_s8 = scalar_lea.hbm %s974_s5, 2048  ;;  %s710_s19 = scalar_lea.hbm %s1110_s1, 8192 }
  0x37   : > { %p706_p7 = scmp.ne.s32.totalorder %s974_s5, %s705_s8  ;;  %p711_p0 = scmp.lt.u32.totalorder %s974_s5, %s1110_s1 }
  0x38   : > { %p712_p2 = scmp.lt.u32.totalorder %s710_s19, %s705_s8  ;;  %p714_p5 = scmp.lt.u32.totalorder %s705_s8, %s974_s5 }
  0x39   : > { %p708_p10 = pnand %p706_p7, %p677_p1 }
  0x3a   : > { %p713_p4 = por %p712_p2, %p711_p0 }
  0x3b   : > { %p709_p12 = pneg %p708_p10 }
  0x3c   : > { %p715_p6 = por %p714_p5, %p713_p4 }
  0x3e   : > { %p716_p9 = pnand %p715_p6, %p709_p12 }
  0x40   : > { %719 = shalt.err (!%p716_p9)
}
  0x41   : > { %s720_s30 = scalar_lea.vmem %s976_s29, 2048  ;;  %s827_s4 = smov [#allocation5]  }
  0x42   : > { %p721_p11 = scmp.ne.s32.totalorder %s976_s29, %s720_s30  ;;  %s725_s10 = sshll.u32 %s827_s4, 4  ;;  %s726_s10 = int_to_ptr.vmem [resolvable:$false] %s725_s10 }
  0x43   : > { %s727_s7 = scalar_lea.vmem %s726_s10, 4096  ;;  %p728_p8 = scmp.lt.s32.totalorder %s976_s29, %s726_s10 }
  0x44   : > { %p723_p7 = pnand %p721_p11, %p677_p1  ;;  %p729_p0 = scmp.lt.s32.totalorder %s727_s7, %s720_s30 }
  0x46   : > { %p724_p10 = pneg %p723_p7  ;;  %p730_p2 = por %p729_p0, %p728_p8 }
  0x48   : > { %p731_p4 = pnand %p730_p2, %p724_p10 }
  0x4a   : > { %734 = shalt.err (!%p731_p4)
}
  0x4b   : > { %614 = dma.hbm_to_vmem [thread:$0]  (!%p929_p13), %s974_s5, 2048, %s976_s29, %s184_s6, %s825_s11, %s825_s11, %s826_s18  }
  0x4c   : > { %212 = sbr.rel (%p966_p3) target bundleno = 353 (0x161), region = 32  ;;  %s1010_s8 = sand.u32 (!%p966_p3), 1, %s805_s13  }
  0x4d   : > { %s508_s19 = sshll.u32 (!%p966_p3), %s1010_s8, 4  ;;  %s215_s9 = scalar_lea.sflag (!%p966_p3), [#allocation3], %s1010_s8 }
  0x4e   : > { %s1016_s23 = scalar_lea.vmem (!%p966_p3), [#allocation2], %s508_s19  ;;  %p1121_p8 = scmp.ne.s32.totalorder (!%p966_p3), %s1116_s24, 0 }
  0x53   : > { %788 = dma.done.wait (%p1121_p8), %s215_s9, 256  }
  0x54   : > { %790 = vsyncadd (%p1121_p8), %s215_s9, 4294967040  ;;  %s509_s28 = sshll.u32 %s1010_s8, 7  ;;  %s224_s11 = scalar_lea.sflag [#allocation6], %s1010_s8 }
  0x55   : > { %s1024_s18 = scalar_lea.vmem [#allocation5], %s509_s28 }
  0x56   : > { %792 = dma.done.wait (%p1121_p8), %s224_s11, 2048  }
  0x57   : > { %794 = vsyncadd (%p1121_p8), %s224_s11, 4294965248  ;;  %v265_v0 = vld [vmem:[%s1024_s18] sm:$0xff]  ;;  %v266_v1 = vld [vmem:[%s1024_s18 + $0x8] sm:$0xff]  ;;  %p259_p13 = scmp.lt.s32.totalorder %s813_s15, 3  ;;  %s257_s6 = scalar_lea.vmem [#allocation7], %s508_s19 }
  0x58   : > { %v267_v2 = vld [vmem:[%s1024_s18 + $0x10] sm:$0xff]  ;;  %v570_v3 = vpack.c.bf16 %v266_v1, %v265_v0  ;;  %v268_v4 = vld [vmem:[%s1024_s18 + $0x18] sm:$0xff]  ;;  %v269_v6 = vld [vmem:[%s1024_s18 + $0x20] sm:$0xff]  ;;  %s381_s22 = sshll.u32 %s257_s6, 4  ;;  %s513_s30 = sshll.u32 %s813_s15, 7  ;;  %s1056_s22 = int_to_ptr.vmem [resolvable:$true] %s381_s22 }
  0x59   : > { %v574_v5 = vpack.c.bf16 %v268_v4, %v267_v2  ;;  %v270_v7 = vld [vmem:[%s1024_s18 + $0x28] sm:$0xff]  ;;  %v263_v9 = vld [vmem:[%s1016_s23] sm:$0xff]  ;;  %v272_v11 = vld [vmem:[%s1024_s18 + $0x38] sm:$0xff]  ;;  %s260_s24 = scalar_select %p259_p13, %s813_s15, 3 }
  0x5a   : > { %571 = vmatprep.subr.bf16.mxu0 %v570_v3  ;;  %v578_v8 = vpack.c.bf16 %v270_v7, %v269_v6  ;;  %v271_v10 = vld [vmem:[%s1024_s18 + $0x30] sm:$0xff]  ;;  %567 = vmatprep.mubr.f32.mxu0 %v263_v9  ;;  %v273_v13 = vld [vmem:[%s1024_s18 + $0x40] sm:$0xff]  ;;  %v274_v14 = vld [vmem:[%s1024_s18 + $0x48] sm:$0xff]  ;;  %s1061_s7 = scalar_lea.hbm %s1112_s3, %s513_s30  ;;  %s366_s19 = scalar_lea.sflag [#allocation4], %s1010_s8 }
  0x5b   : > { %573 = vmatpush3.bf16.msra.mxu0 %v570_v3  ;;  %v582_v12 = vpack.c.bf16 %v272_v11, %v271_v10  ;;  %v586_v15 = vpack.c.bf16 %v274_v14, %v273_v13  ;;  %v275_v16 = vld [vmem:[%s1024_s18 + $0x50] sm:$0xff]  ;;  %v276_v17 = vld [vmem:[%s1024_s18 + $0x58] sm:$0xff]  ;;  %v277_v19 = vld [vmem:[%s1024_s18 + $0x60] sm:$0xff]  ;;  %s261_s5 = scalar_lea.vmem %s1111_s2, %s260_s24  ;;  %s735_s9 = scalar_lea.vmem %s1056_s22, 256 }
  0x5c   : > { %575 = vmatprep.subr.bf16.mxu0 %v574_v5  ;;  %v590_v18 = vpack.c.bf16 %v276_v17, %v275_v16  ;;  %v278_v20 = vld [vmem:[%s1024_s18 + $0x68] sm:$0xff]  ;;  %v279_v22 = vld [vmem:[%s1024_s18 + $0x70] sm:$0xff]  ;;  %v280_v23 = vld [vmem:[%s1024_s18 + $0x78] sm:$0xff]  ;;  %p736_p1 = scmp.ne.s32.totalorder %s1056_s22, %s735_s9  ;;  %p1122_p3 = scmp.ne.s32.totalorder %s1117_s25, 0 }
  0x5d   : > { %v594_v21 = vpack.c.bf16 %v278_v20, %v277_v19  ;;  %v598_v24 = vpack.c.bf16 %v280_v23, %v279_v22  ;;  %v264_v25 = vld [vmem:[%s1016_s23 + $0x8] sm:$0xff]  ;;  %v511_v26 = vld [vmem:[%s261_s5] ss:$0 sm:$0xff]  ;;  %s828_s15 = smov [#allocation7]  }
  0x5e   : > { %p737_p12 = pnand %p736_p1, %p1122_p3  ;;  %s739_s23 = sshll.u32 %s828_s15, 4  ;;  %s740_s23 = int_to_ptr.vmem [resolvable:$false] %s739_s23 }
  0x5f   : > { %577 = vmatpush3.bf16.msra.mxu0 %v574_v5  ;;  %s741_s28 = scalar_lea.vmem %s740_s23, 512  ;;  %p742_p6 = scmp.lt.s32.totalorder %s1056_s22, %s740_s23 }
  0x60   : > { %579 = vmatprep.subr.bf16.mxu0 %v578_v8  ;;  %p738_p5 = pneg %p737_p12  ;;  %p743_p9 = scmp.lt.s32.totalorder %s741_s28, %s735_s9 }
  0x62   : > { %p744_p11 = por %p743_p9, %p742_p6 }
  0x63   : > { %581 = vmatpush3.bf16.msra.mxu0 %v578_v8 }
  0x64   : > { %583 = vmatprep.subr.bf16.mxu0 %v582_v12  ;;  %p745_p7 = pnand %p744_p11, %p738_p5 }
  0x67   : > { %585 = vmatpush3.bf16.msra.mxu0 %v582_v12 }
  0x68   : > { %587 = vmatprep.subr.bf16.mxu0 %v586_v15 }
  0x6b   : > { %589 = vmatpush3.bf16.msra.mxu0 %v586_v15 }
  0x6c   : > { %591 = vmatprep.subr.bf16.mxu0 %v590_v18 }
  0x6f   : > { %593 = vmatpush3.bf16.msra.mxu0 %v590_v18 }
  0x70   : > { %595 = vmatprep.subr.bf16.mxu0 %v594_v21 }
  0x73   : > { %597 = vmatpush3.bf16.msra.mxu0 %v594_v21 }
  0x74   : > { %599 = vmatprep.subr.bf16.mxu0 %v598_v24 }
  0x77   : > { %601 = vmatpush3.bf16.msra.mxu0 %v598_v24 }
  0x7a   : > { %568 = vmatmul.mubr.f32.vlgmr.msra.gmra.mrb[0].mxu0 %v264_v25 }
 0x14d   : > { %v569_v27 = vpop.f32.mrb[0].mxu0 }
 0x14e   : > { %v360_v28 = vadd.f32 %v569_v27, %v511_v26  ;;  %v354_v29 = vpop.f32.mrb[1].mxu0 }
 0x14f   : > { %v355_v30 = vadd.f32 %v511_v26, %v354_v29 }
 0x150   : > { %364 = vst [vmem:[%s257_s6 + $0x8] sm:$0xff] %v360_v28 }
 0x151   : > { %363 = vst [vmem:[%s257_s6] sm:$0xff] %v355_v30 }
 0x152   : > { %748 = shalt.err (!%p745_p7)
}
 0x153   : > { %s749_s11 = scalar_lea.hbm %s1061_s7, 256  ;;  %s753_s21 = scalar_lea.hbm %s1112_s3, 1024 }
 0x154   : > { %p750_p10 = scmp.ne.s32.totalorder %s1061_s7, %s749_s11  ;;  %p754_p4 = scmp.lt.u32.totalorder %s1061_s7, %s1112_s3 }
 0x155   : > { %p755_p8 = scmp.lt.u32.totalorder %s753_s21, %s749_s11  ;;  %p757_p1 = scmp.lt.u32.totalorder %s749_s11, %s1061_s7 }
 0x156   : > { %p751_p0 = pnand %p750_p10, %p1122_p3 }
 0x157   : > { %p756_p13 = por %p755_p8, %p754_p4 }
 0x158   : > { %p752_p2 = pneg %p751_p0 }
 0x159   : > { %p758_p12 = por %p757_p1, %p756_p13 }
 0x15b   : > { %p759_p5 = pnand %p758_p12, %p752_p2 }
 0x15d   : > { %762 = shalt.err (!%p759_p5)
}
 0x15e   : > { %s829_s6 = smov 128   ;;  %s830_s30 = smov 512  }
 0x15f   : > { %s831_s4 = smov 8  }
 0x160   : > { %606 = dma.vmem_to_hbm [thread:$0]  (%p1122_p3), %s1056_s22, 256, %s1061_s7, %s366_s19, %s829_s6, %s830_s30, %s831_s4  }
 0x161 PF: > { %p620_p6 = scmp.ge.s32.totalorder %s821_s17, 2  ;;  %s396_s10 = sand.u32 1, %s801_s12  }
 0x162   : > { %p1123_p9 = scmp.ne.s32.totalorder %s1118_s27, 0  ;;  %s397_s9 = scalar_lea.sflag [#allocation4], %s396_s10 }
 0x164   : > { %p616_p11 = pnand %p620_p6, %p1123_p9 }
 0x166   : > { %796 = dma.done.wait (!%p616_p11), %s397_s9, 256  }
 0x167   : > { %798 = vsyncadd (!%p616_p11), %s397_s9, 4294967040  ;;  %s22_s17 = sadd.s32 1, %s821_s17   ;;  %s1124_s12 = smov %s805_s13 }
 0x168   : > { %p19_p7 = scmp.ge.s32.totalorder %s22_s17, 6   ;;  %s1125_s13 = smov %s809_s14 }
 0x169   : > { %s1126_s14 = smov %s908_s26  ;;  %s1127_s15 = smov %s817_s16 }
 0x16a   : > { %s1128_s16 = smov %s1130_s20  ;;  %21 = sbr.rel (!%p19_p7) target bundleno = 8 (0x8), region = 93 }
 0x171   :  { %402 = vsyncpa [#allocation3], 1 }
 0x172   :  { %404 = vsyncpa [#allocation3 + $0x1], 1 }
 0x173   :  { %405 = vsyncpa [#allocation6], 1 }
 0x174   :  { %407 = vsyncpa [#allocation6 + $0x1], 1 }
 0x175   :  { %408 = vsyncpa [#allocation4], 1 }
 0x176   :  { %410 = vsyncpa [#allocation4 + $0x1], 1 }

</bundles_post_ra>
